<compile_context>
chip_gen: v7x
topology: tpu7x:2x2x1
jax: 0.10.0
libtpu: 0.0.40
codegen_flags: <defaults>
</compile_context>

<pallas_src>
import jax
import jax.numpy as jnp
from jax import lax
from jax.experimental import pallas as pl
from jax.experimental.pallas import tpu as pltpu

_MIB = 1024 * 1024


def _vmem_budget_bytes():
    """Tile-planning budget: half of physical VMEM, capped at 64 MiB."""
    phys = 64 * _MIB  # conservative default = v7x per-TensorCore VMEM
    try:
        info = pltpu.get_tpu_info()
        phys = int(getattr(info, "vmem_capacity_bytes", phys))
    except Exception:
        pass
    return min(phys // 2, 64 * _MIB)


# ---------------------------------------------------------------------------
# Shared kernel body: out_block = x_block @ W_block^T + bias_block.
# x_block: (tm, K), w_block: (tn, K)  (PyTorch layout), bias: (1, tn).
# ---------------------------------------------------------------------------
def _linear_kernel(x_ref, w_ref, b_ref, o_ref):
    acc = lax.dot_general(
        x_ref[...], w_ref[...],
        dimension_numbers=(((1,), (1,)), ((), ())),   # contract axis 1 of both
        preferred_element_type=jnp.float32,            # f32 MXU accumulation
    )
    o_ref[...] = (acc + b_ref[...]).astype(o_ref.dtype)


# ---------------------------------------------------------------------------
# Small shapes: whole problem in one VMEM block, no grid machinery.
# ---------------------------------------------------------------------------
def _linear_single_block(x, weight, bias2d, *, vmem_limit):
    M = x.shape[0]
    N = weight.shape[0]
    vmem = pl.BlockSpec(memory_space=pltpu.MemorySpace.VMEM)
    return pl.pallas_call(
        _linear_kernel,
        out_shape=jax.ShapeDtypeStruct((M, N), x.dtype),
        in_specs=[vmem, vmem, vmem],
        out_specs=vmem,
        compiler_params=pltpu.CompilerParams(vmem_limit_bytes=vmem_limit),
    )(x, weight, bias2d)


# ---------------------------------------------------------------------------
# Streaming path: grid over (M, N) only, K collapsed into every block.
# ---------------------------------------------------------------------------
def _pick_tiles(M, N, K, x_bytes, w_bytes, out_bytes, budget):
    def footprint(tm, tn):
        # Double-buffered x / W / out blocks + bias block.
        return (2 * tm * K * x_bytes
                + 2 * tn * K * w_bytes
                + 2 * tm * tn * out_bytes
                + 2 * tn * out_bytes)

    def valid_tm(t):
        return t == M or (0 < t <= M and t % 8 == 0)

    def valid_tn(t):
        return t == N or (0 < t <= N and t % 128 == 0)

    # Prefer ~ceil(M/2) so v7x's two TensorCores each get an M block.
    half_m = -(-M // 2)
    half_m = -(-half_m // 8) * 8
    tm_cands = []
    for c in (half_m, 2048, 1024, 512, 256, 128, 64, 32, 16, 8, M):
        if valid_tm(c) and c not in tm_cands:
            tm_cands.append(c)

    # Prefer full-N weight residency (weight streams from HBM exactly once).
    tn_cands = []
    for c in (N, 4096, 2048, 1024, 512, 256, 128):
        if valid_tn(c) and c not in tn_cands:
            tn_cands.append(c)

    for tn in tn_cands:
        for tm in tm_cands:
            if footprint(tm, tn) <= budget:
                return tm, tn
    # TODO(synk): very large K would need the K-tiled accumulator variant; fall
    # back to the smallest streaming tiles (may exceed the soft budget).
    return min(tm_cands), min(tn_cands)


def _linear_streamed(x, weight, bias2d, *, vmem_limit, tile_budget):
    M, K = x.shape
    N = weight.shape[0]
    x_bytes = jnp.dtype(x.dtype).itemsize
    w_bytes = jnp.dtype(weight.dtype).itemsize
    tm, tn = _pick_tiles(M, N, K, x_bytes, w_bytes, x_bytes, tile_budget)
    grid = (pl.cdiv(M, tm), pl.cdiv(N, tn))
    return pl.pallas_call(
        _linear_kernel,
        out_shape=jax.ShapeDtypeStruct((M, N), x.dtype),
        grid_spec=pltpu.PrefetchScalarGridSpec(
            num_scalar_prefetch=0,
            grid=grid,
            in_specs=[
                pl.BlockSpec((tm, K), lambda i, j: (i, 0)),   # activations
                pl.BlockSpec((tn, K), lambda i, j: (j, 0)),   # weight (out, in)
                pl.BlockSpec((1, tn), lambda i, j: (0, j)),   # bias
            ],
            out_specs=pl.BlockSpec((tm, tn), lambda i, j: (i, j)),
        ),
        compiler_params=pltpu.CompilerParams(
            dimension_semantics=("parallel", "parallel"),
            vmem_limit_bytes=vmem_limit,
        ),
    )(x, weight, bias2d)


def dqn_forward(x, weight, bias, *, force_tiled=False):
    """DQN.forward == nn.Linear: returns x @ weight.T + bias.

    x:      (batch, input_size)
    weight: (output_size, input_size)   (PyTorch nn.Linear layout)
    bias:   (output_size,)
    For bf16 execution, cast weight/bias once at parameter load and feed bf16
    activations; the kernel never casts internally and accumulates in f32.
    """
    M, K = x.shape
    N, Kw = weight.shape
    assert K == Kw and bias.shape == (N,)

    # Only cast on dtype mismatch (normal configs pass matched dtypes through).
    if weight.dtype != x.dtype:
        weight = weight.astype(x.dtype)
    if bias.dtype != x.dtype:
        bias = bias.astype(x.dtype)
    bias2d = bias.reshape(1, N)   # metadata-only reshape

    budget = _vmem_budget_bytes()
    whole_bytes = (x.size * jnp.dtype(x.dtype).itemsize
                   + weight.size * jnp.dtype(weight.dtype).itemsize
                   + bias.size * jnp.dtype(bias.dtype).itemsize
                   + M * N * jnp.dtype(x.dtype).itemsize)
    small_gate = min(budget // 8, 8 * _MIB)

    if not force_tiled and whole_bytes <= small_gate:
        return _linear_single_block(x, weight, bias2d, vmem_limit=budget)
    return _linear_streamed(x, weight, bias2d,
                            vmem_limit=budget, tile_budget=(budget * 3) // 4)


if __name__ == "__main__":
    key = jax.random.PRNGKey(0)
    ks = jax.random.split(key, 9)

    # --- DQN-scale shapes from the module -> single-block (no-grid) path. ---
    input_size, output_size, batch = 32, 8, 2
    bound = 1.0 / (input_size ** 0.5)
    weight = jax.random.uniform(ks[0], (output_size, input_size), jnp.float32,
                                minval=-bound, maxval=bound)
    bias = jax.random.uniform(ks[1], (output_size,), jnp.float32,
                              minval=-bound, maxval=bound)
    x = jax.random.normal(ks[2], (batch, input_size), jnp.float32)
    out = jax.block_until_ready(dqn_forward(x, weight, bias))
    ref = x @ weight.T + bias
    assert out.shape == (batch, output_size)
    assert jnp.allclose(out, ref, atol=1e-5, rtol=1e-5), "single-block mismatch"

    # --- Replay-buffer-scale batch -> streamed path (K collapsed). ---
    M2, K2, N2 = 256, 512, 256
    bound2 = 1.0 / (K2 ** 0.5)
    w2 = jax.random.uniform(ks[3], (N2, K2), jnp.float32, minval=-bound2, maxval=bound2)
    b2 = jax.random.uniform(ks[4], (N2,), jnp.float32, minval=-bound2, maxval=bound2)
    x2 = jax.random.normal(ks[5], (M2, K2), jnp.float32)
    ref2 = x2 @ w2.T + b2
    out2 = jax.block_until_ready(dqn_forward(x2, w2, b2, force_tiled=True))
    assert out2.shape == (M2, N2)
    assert jnp.allclose(out2, ref2, atol=2e-2, rtol=2e-2), "streamed f32 mismatch"

    # bf16 params + activations: one-time host cast -> bf16 HBM/DMA traffic,
    # f32 accumulation inside the kernel.
    out3 = jax.block_until_ready(
        dqn_forward(x2.astype(jnp.bfloat16), w2.astype(jnp.bfloat16),
                    b2.astype(jnp.bfloat16), force_tiled=True))
    assert jnp.allclose(out3.astype(jnp.float32), ref2,
                        atol=5e-2, rtol=5e-2), "streamed bf16 mismatch"

    # Non-tile-divisible shape -> cdiv grid with masked edge blocks.
    M3, K3, N3 = 100, 48, 40
    bound3 = 1.0 / (K3 ** 0.5)
    w3 = jax.random.uniform(ks[6], (N3, K3), jnp.float32, minval=-bound3, maxval=bound3)
    b3 = jax.random.uniform(ks[7], (N3,), jnp.float32, minval=-bound3, maxval=bound3)
    x3 = jax.random.normal(ks[8], (M3, K3), jnp.float32)
    out4 = jax.block_until_ready(dqn_forward(x3, w3, b3, force_tiled=True))
    assert out4.shape == (M3, N3)
    assert jnp.allclose(out4, x3 @ w3.T + b3, atol=1e-2, rtol=1e-2), "ragged mismatch"

    print("KERNEL_OK")
</pallas_src>

<mosaic_0001>
module attributes {stable_mosaic.version = 11 : i64} {
  func.func @_linear_kernel(%arg0: memref<2x32xf32, #tpu.memory_space<vmem>>, %arg1: memref<8x32xf32, #tpu.memory_space<vmem>>, %arg2: memref<1x8xf32, #tpu.memory_space<vmem>>, %arg3: memref<2x8xf32, #tpu.memory_space<vmem>>) attributes {dimension_semantics = [], scalar_prefetch = 0 : i64, scratch_operands = 0 : i64, tpu.core_type = #tpu.core_type<tc>} {
    %c0 = arith.constant 0 : index
    %c0_0 = arith.constant 0 : index
    %0 = vector.load %arg0[%c0, %c0_0] : memref<2x32xf32, #tpu.memory_space<vmem>>, vector<2x32xf32>
    %c0_1 = arith.constant 0 : index
    %c0_2 = arith.constant 0 : index
    %1 = vector.load %arg1[%c0_1, %c0_2] : memref<8x32xf32, #tpu.memory_space<vmem>>, vector<8x32xf32>
    %cst = arith.constant dense<0.000000e+00> : vector<2x8xf32>
    %2 = tpu.matmul %0, %1, %cst {dimension_numbers = #tpu.dot_dimension_numbers<[1], [1], [0], [0], [0, 0, 1, 0], [], []>} : vector<2x32xf32>, vector<8x32xf32>, vector<2x8xf32> -> vector<2x8xf32>
    %c0_3 = arith.constant 0 : index
    %c0_4 = arith.constant 0 : index
    %3 = vector.load %arg2[%c0_3, %c0_4] : memref<1x8xf32, #tpu.memory_space<vmem>>, vector<1x8xf32>
    %4 = vector.broadcast %3 : vector<1x8xf32> to vector<2x8xf32>
    %5 = arith.addf %2, %4 : vector<2x8xf32>
    %c0_5 = arith.constant 0 : index
    %c0_6 = arith.constant 0 : index
    %6 = vector.load %arg3[%c0_5, %c0_6] : memref<2x8xf32, #tpu.memory_space<vmem>>, vector<2x8xf32>
    tpu.vector_store %arg3[%c0_5, %c0_6], %5 {strides = array<i32>} : memref<2x8xf32, #tpu.memory_space<vmem>>, vector<2x8xf32>,
    return
  }
}

</mosaic_0001>

<bundles_post_ra>
// kernel: tpu_custom_call.1
= control target key start
LH: loop header
LB: loop body
LE: loop exit
PB: predicated region body
PF: predicated region fallthrough
CT: control target
= control target key end

     0   :  { %8 = vsyncpa [#allocation3], 0  ;;  %s294_s0 = inlined_call_operand.hbm [shape: f32[2,32], index: 0, kind: input, shape index: {}]   ;;  %s295_s1 = inlined_call_operand.hbm [shape: f32[8,32], index: 1, kind: input, shape index: {}]   ;;  %s296_s2 = inlined_call_operand.vmem [shape: f32[1,8], index: 2, kind: input, shape index: {}]   ;;  %s297_s3 = inlined_call_operand.hbm [shape: f32[2,8], index: 3, kind: output, shape index: {}]  }
   0x1   :  { %9 = vsyncpa [#allocation6], 0 }
   0x2   :  { %10 = vsyncpa [#allocation4], 0  ;;  %s230_s12 = smov [#allocation2]   ;;  %s231_s14 = smov [#allocation5]  }
   0x3   :  { %s17_s13 = sshll.u32 %s230_s12, 4  ;;  %s27_s15 = sshll.u32 %s231_s14, 4  ;;  %s18_s13 = int_to_ptr.vmem [resolvable:$true] %s17_s13  ;;  %s28_s15 = int_to_ptr.vmem [resolvable:$true] %s27_s15 }
   0x4   :  { %s158_s18 = scalar_lea.hbm %s294_s0, 32 }
   0x5   :  { %p159_p0 = scmp.ne.s32.totalorder %s294_s0, %s158_s18  ;;  %p162_p1 = scmp.lt.u32.totalorder %s158_s18, %s294_s0 }
   0x7   :  { %p164_p2 = pnand %p162_p1, %p159_p0 }
   0x9   :  { %167 = shalt.err (!%p164_p2)
}
   0xa   :  { %s168_s23 = scalar_lea.vmem %s18_s13, 32  ;;  %p173_p4 = scmp.lt.s32.totalorder %s18_s13, %s18_s13 }
   0xb   :  { %p169_p3 = scmp.ne.s32.totalorder %s18_s13, %s168_s23  ;;  %p174_p5 = scmp.lt.s32.totalorder %s168_s23, %s168_s23 }
   0xd   :  { %p175_p6 = por %p174_p5, %p173_p4 }
   0xf   :  { %p176_p7 = pnand %p175_p6, %p169_p3 }
  0x11   :  { %179 = shalt.err (!%p176_p7)
}
  0x12   :  { %20 = dma.hbm_to_vmem [thread:$0]  %s294_s0, 32, %s18_s13, [#allocation3]  }
  0x13   :  { %s180_s28 = scalar_lea.hbm %s295_s1, 128 }
  0x14   :  { %p181_p8 = scmp.ne.s32.totalorder %s295_s1, %s180_s28  ;;  %p184_p9 = scmp.lt.u32.totalorder %s180_s28, %s295_s1 }
  0x16   :  { %p186_p10 = pnand %p184_p9, %p181_p8 }
  0x18   :  { %189 = shalt.err (!%p186_p10)
}
  0x19   :  { %s190_s6 = scalar_lea.vmem %s28_s15, 128  ;;  %p195_p12 = scmp.lt.s32.totalorder %s28_s15, %s28_s15 }
  0x1a   :  { %p191_p11 = scmp.ne.s32.totalorder %s28_s15, %s190_s6  ;;  %p196_p13 = scmp.lt.s32.totalorder %s190_s6, %s190_s6 }
  0x1c   :  { %p197_p0 = por %p196_p13, %p195_p12 }
  0x1e   :  { %p198_p1 = pnand %p197_p0, %p191_p11 }
  0x20   :  { %201 = shalt.err (!%p198_p1)
}
  0x21   :  { %30 = dma.hbm_to_vmem [thread:$0]  %s295_s1, 128, %s28_s15, [#allocation6]  }
  0x22   :  { %224 = dma.done.wait [#allocation3], 32  }
  0x23   :  { %225 = vsyncadd [#allocation3], 4294967264 }
  0x24   :  { %226 = dma.done.wait [#allocation6], 128  }
  0x25   :  { %227 = vsyncadd [#allocation6], 4294967168  ;;  %v232_v0 = vmov 0.0   ;;  %vm233_vm0 = vmmov 0   ;;  %vm48_vm1 = vcmask 261120   ;;  %v40_v1 = vld [vmem:[#allocation5] sm:$0xff] }
  0x26   :  { %148 = vmatprep.subr.mxu0 %v232_v0  ;;  %150 = vmatprep.mubr.msk.f32.mxu0 %vm233_vm0, %v232_v0  ;;  %v39_v2 = vld [vmem:[#allocation2] sm:$0x3]  ;;  %s234_s10 = smov [#allocation7]   ;;  %vm125_vm2 = vcmask 58368  }
  0x27   :  { %149 = vmatpush3.xpose.msk.msra.mxu0 %vm48_vm1, %v40_v1  ;;  %v143_v3 = vld [vmem:[%s296_s2] ss:$0 sm:$0xff]  ;;  %s133_s11 = sshll.u32 %s234_s10, 4  ;;  %s134_s11 = int_to_ptr.vmem [resolvable:$true] %s133_s11 }
  0x28   :  { %s202_s1 = scalar_lea.vmem %s134_s11, 32  ;;  %p207_p3 = scmp.lt.s32.totalorder %s134_s11, %s134_s11 }
  0x29   :  { %p203_p2 = scmp.ne.s32.totalorder %s134_s11, %s202_s1  ;;  %p208_p4 = scmp.lt.s32.totalorder %s202_s1, %s202_s1 }
  0x2a   :  { %151 = vmatmul.mubr.msk.f32.vlgmr.msra.gmra.mrb[0].mxu0 %vm48_vm1, %v39_v2 }
  0x2b   :  { %p209_p5 = por %p208_p4, %p207_p3 }
  0x2d   :  { %p210_p6 = pnand %p209_p5, %p203_p2 }
  0xfd   :  { %v121_v4 = vpop.f32.mrb[0].mxu0 }
  0xfe   :  { %v122_v5 = vadd.f32 %v143_v3, %v121_v4  ;;  %v152_v6 = vpop.f32.mrb[1].mxu0 }
 0x100   :  { %126 = vst.msk [vmem:[#allocation7] sm:$0x3] %vm125_vm2, %v122_v5 }
 0x101   :  { %213 = shalt.err (!%p210_p6)
}
 0x102   :  { %s214_s14 = scalar_lea.hbm %s297_s3, 32 }
 0x103   :  { %p215_p7 = scmp.ne.s32.totalorder %s297_s3, %s214_s14  ;;  %p218_p8 = scmp.lt.u32.totalorder %s214_s14, %s297_s3 }
 0x105   :  { %p220_p9 = pnand %p218_p8, %p215_p7 }
 0x107   :  { %223 = shalt.err (!%p220_p9)
}
 0x108   :  { %136 = dma.vmem_to_hbm [thread:$0]  %s134_s11, 32, %s297_s3, [#allocation4]  }
 0x109   :  { %228 = dma.done.wait [#allocation4], 32  }
 0x10a   :  { %229 = vsyncadd [#allocation4], 4294967264 }
 0x10b   :  { %140 = vsyncpa [#allocation3], 1 }
 0x10c   :  { %141 = vsyncpa [#allocation6], 1 }
 0x10d   :  { %142 = vsyncpa [#allocation4], 1 }

</bundles_post_ra>
